<compile_context>
chip_gen: v7x
topology: tpu7x:2x2x1
jax: 0.10.0
libtpu: 0.0.40
codegen_flags: <defaults>
</compile_context>

<pallas_src>
import functools

import jax
import jax.numpy as jnp
from jax import lax
from jax.experimental import pallas as pl
from jax.experimental.pallas import tpu as pltpu


def _tensorcores_per_chip():
    """Trace-time TensorCore count; 2 on megacore-style chips (v4/v5p/v7x)."""
    try:
        info = pltpu.get_tpu_info()
        for attr in ("num_cores", "num_tensorcores", "tensorcores_per_chip",
                     "cores_per_chip"):
            v = getattr(info, attr, None)
            if isinstance(v, int) and v > 0:
                return v
    except Exception:
        pass
    try:
        dev = jax.devices()[0]
        kind = str(getattr(dev, "device_kind", "")).lower()
    except Exception:
        return 1
    for tag in ("v7", "v5p", "v4"):
        if tag in kind:
            return 2
    return 1


def _conv3x3_relu_kernel(x_ref, w_ref, b_ref, o_ref, xpad_ref, patch_ref,
                         *, W, FRONT, NB):
    # x_ref:     (NB, Cin, H*W)     flattened (row-major) images
    # w_ref:     (Cout, 9*Cin)      folded conv weights, tap-major, chan-minor
    # b_ref:     (Cout, 1)          bias
    # o_ref:     (NB, Cout, H*W)    lane-dense output slab
    # xpad_ref:  (NB, Cin, PADLEN)  VMEM scratch: zero halo + image interior
    # patch_ref: (9*Cin, NB*H*W)    VMEM scratch: im2col patch
    Cin = x_ref.shape[1]
    HW = x_ref.shape[2]
    base = FRONT - (W + 1)

    # In-kernel boundary masks (replaces the former (2, HW) HBM input).
    # Generated directly at (Cin, HW) so nothing is re-broadcast per tap.
    col = lax.broadcasted_iota(jnp.int32, (Cin, HW), 1)
    col = (col & (W - 1)) if (W & (W - 1)) == 0 else (col % W)
    mask_l = col != 0          # kills row-wrap artifacts for dw == 0 taps
    mask_r = col != (W - 1)    # kills row-wrap artifacts for dw == 2 taps

    halo_zeros = jnp.zeros((Cin, W + 1), dtype=x_ref.dtype)

    for b in range(NB):
        # Zero ONLY the halo lanes the taps read:
        #   [FRONT-(W+1), FRONT)            -> padded row "-1"
        #   [FRONT+HW,    FRONT+HW+W+1)     -> padded row "H"
        xpad_ref[b, :, base:FRONT] = halo_zeros
        xpad_ref[b, :, FRONT + HW:FRONT + HW + W + 1] = halo_zeros
        # Image interior at a 128-aligned lane offset.
        xpad_ref[b, :, FRONT:FRONT + HW] = x_ref[b]

        # im2col: each of the 9 taps is a static lane-shifted view of the
        # padded flat row; left/right row-wrap artifacts are masked to zero.
        for idx in range(9):
            dh, dw = idx // 3, idx % 3
            s = base + dh * W + dw
            tap = xpad_ref[b, :, s:s + HW]               # (Cin, HW)
            if dw == 0:
                tap = jnp.where(mask_l, tap, 0.0)
            elif dw == 2:
                tap = jnp.where(mask_r, tap, 0.0)
            patch_ref[idx * Cin:(idx + 1) * Cin, b * HW:(b + 1) * HW] = tap

    # One folded MXU matmul spanning all NB images:
    #   (Cout, 9*Cin) @ (9*Cin, NB*HW), f32 accumulation.
    acc = jnp.dot(w_ref[...], patch_ref[...],
                  preferred_element_type=jnp.float32)
    acc = acc + b_ref[...].astype(jnp.float32)           # bias
    acc = jnp.maximum(acc, 0.0)                          # ReLU

    for b in range(NB):
        # HW is a multiple of 128 -> these lane slices stay aligned and the
        # stores remain unmasked.
        o_ref[b] = acc[:, b * HW:(b + 1) * HW].astype(o_ref.dtype)


def dpdnn_encoder_end(x_nchw, weight_oihw, bias):
    """Conv2d(3x3, padding=1) + ReLU, matching PyTorch NCHW semantics.

    x_nchw:      (N, Cin, H, W)
    weight_oihw: (Cout, Cin, 3, 3)   (PyTorch layout)
    bias:        (Cout,)
    returns:     (N, Cout, H, W)
    """
    N, Cin, H, W = x_nchw.shape
    Cout = weight_oihw.shape[0]
    HW = H * W

    # Padded-flat-row geometry: FRONT is a 128-aligned left halo so the
    # in-kernel interior store is lane-aligned; tap (dh, dw) reads at
    # FRONT - (W+1) + dh*W + dw.
    FRONT = ((W + 1 + 127) // 128) * 128
    PADLEN = HW + 2 * FRONT

    # Wrapper-side reshapes below are contiguous -> free (no HBM pass);
    # no transposes of activations, no pads outside the kernel.
    x_flat = x_nchw.reshape(N, Cin, HW)
    w_fold = jnp.transpose(weight_oihw, (0, 2, 3, 1)).reshape(Cout, 9 * Cin)
    b2d = bias.reshape(Cout, 1)

    # Grid policy (per the perf review):
    #   * single-TC chips (v5e/v6e): collapse the batch into ONE grid step
    #     (one matmul over all images) to kill per-step overhead;
    #   * 2-TC chips (v7x): keep grid=(N,) "parallel" so each core takes one
    #     image and overlaps the per-step overhead.
    patch_bytes = 9 * Cin * N * HW * x_nchw.dtype.itemsize
    collapse = (_tensorcores_per_chip() < 2
                and HW % 128 == 0
                and patch_bytes <= (4 << 20))

    if collapse:
        nb, grid, sem = N, (1,), ("arbitrary",)
        x_map = lambda i: (0, 0, 0)
        o_map = lambda i: (0, 0, 0)
    else:
        nb, grid, sem = 1, (N,), ("parallel",)
        x_map = lambda b: (b, 0, 0)
        o_map = lambda b: (b, 0, 0)

    kernel = functools.partial(_conv3x3_relu_kernel, W=W, FRONT=FRONT, NB=nb)

    out_flat = pl.pallas_call(
        kernel,
        out_shape=jax.ShapeDtypeStruct((N, Cout, HW), x_nchw.dtype),
        grid_spec=pltpu.PrefetchScalarGridSpec(
            num_scalar_prefetch=0,
            grid=grid,
            in_specs=[
                pl.BlockSpec((nb, Cin, HW), x_map),
                pl.BlockSpec((Cout, 9 * Cin), lambda b: (0, 0)),
                pl.BlockSpec((Cout, 1), lambda b: (0, 0)),
            ],
            out_specs=pl.BlockSpec((nb, Cout, HW), o_map),
            scratch_shapes=[
                pltpu.VMEM((nb, Cin, PADLEN), x_nchw.dtype),
                pltpu.VMEM((9 * Cin, nb * HW), x_nchw.dtype),
            ],
        ),
        compiler_params=pltpu.CompilerParams(dimension_semantics=sem),
    )(x_flat, w_fold, b2d)

    # Free (contiguous) reshape back to PyTorch NCHW output layout.
    return out_flat.reshape(N, Cout, H, W)


if __name__ == "__main__":
    key = jax.random.PRNGKey(0)
    k_x, k_w, k_b = jax.random.split(key, 3)

    # Small shapes consistent with the module: batch=2, num_in=4, num_out=8,
    # spatial 16x16.
    N, Cin, Cout, H, W = 2, 4, 8, 16, 16

    x = jax.random.normal(k_x, (N, Cin, H, W), dtype=jnp.float32)
    # Deterministic "PyTorch-like" init (uniform in +/- 1/sqrt(fan_in)).
    fan_in = Cin * 3 * 3
    bound = 1.0 / jnp.sqrt(jnp.float32(fan_in))
    weight = jax.random.uniform(k_w, (Cout, Cin, 3, 3),
                                minval=-bound, maxval=bound,
                                dtype=jnp.float32)
    bias = jax.random.uniform(k_b, (Cout,), minval=-bound, maxval=bound,
                              dtype=jnp.float32)

    out = dpdnn_encoder_end(x, weight, bias)
    out = jax.block_until_ready(out)

    # Cross-check against lax reference conv (same semantics as nn.Conv2d).
    ref = jax.lax.conv_general_dilated(
        x, weight, window_strides=(1, 1), padding=((1, 1), (1, 1)),
        dimension_numbers=("NCHW", "OIHW", "NCHW"))
    ref = jnp.maximum(ref + bias[None, :, None, None], 0.0)
    assert out.shape == (N, Cout, H, W)
    assert jnp.allclose(out, ref, atol=1e-4, rtol=1e-4)

    print("KERNEL_OK")
</pallas_src>

<mosaic_0001>
module attributes {stable_mosaic.version = 11 : i64} {
  func.func @_conv3x3_relu_kernel(%arg0: i32, %arg1: memref<2x4x256xf32, #tpu.memory_space<vmem>>, %arg2: memref<8x36xf32, #tpu.memory_space<vmem>>, %arg3: memref<8x1xf32, #tpu.memory_space<vmem>>, %arg4: memref<2x8x256xf32, #tpu.memory_space<vmem>>, %arg5: memref<2x4x512xf32, #tpu.memory_space<vmem>>, %arg6: memref<36x512xf32, #tpu.memory_space<vmem>>) attributes {dimension_semantics = [#tpu.dimension_semantics<arbitrary>], iteration_bounds = array<i64: 1>, scalar_prefetch = 0 : i64, scratch_operands = 2 : i64, tpu.core_type = #tpu.core_type<tc>, window_params = [{pipeline_mode = #tpu.pipeline_mode<synchronous>, transform_indices = @transform_0, window_bounds = array<i64: 2, 4, 256>}, {pipeline_mode = #tpu.pipeline_mode<synchronous>, transform_indices = @transform_1, window_bounds = array<i64: 8, 36>}, {pipeline_mode = #tpu.pipeline_mode<synchronous>, transform_indices = @transform_2, window_bounds = array<i64: 8, 1>}, {pipeline_mode = #tpu.pipeline_mode<synchronous>, transform_indices = @transform_3, window_bounds = array<i64: 2, 8, 256>}]} {
    %0 = tpu.iota {dimensions = array<i32: 1>} : vector<4x256xi32>
    %c15_i32 = arith.constant 15 : i32
    %1 = vector.broadcast %c15_i32 : i32 to vector<4x256xi32>
    %2 = arith.andi %0, %1 : vector<4x256xi32>
    %c0_i32 = arith.constant 0 : i32
    %3 = vector.broadcast %c0_i32 : i32 to vector<4x256xi32>
    %4 = arith.cmpi ne, %2, %3 : vector<4x256xi32>
    %c15_i32_0 = arith.constant 15 : i32
    %5 = vector.broadcast %c15_i32_0 : i32 to vector<4x256xi32>
    %6 = arith.cmpi ne, %2, %5 : vector<4x256xi32>
    %cst = arith.constant 0.000000e+00 : f32
    %7 = vector.broadcast %cst : f32 to vector<4x17xf32>
    %c0 = arith.constant 0 : index
    %c0_1 = arith.constant 0 : index
    %c111 = arith.constant 111 : index
    %8 = vector.load %arg5[%c0, %c0_1, %c111] : memref<2x4x512xf32, #tpu.memory_space<vmem>>, vector<1x4x17xf32>
    %9 = vector.shape_cast %8 : vector<1x4x17xf32> to vector<4x17xf32>
    %10 = vector.shape_cast %7 : vector<4x17xf32> to vector<1x4x17xf32>
    tpu.vector_store %arg5[%c0, %c0_1, %c111], %10 {strides = array<i32>} : memref<2x4x512xf32, #tpu.memory_space<vmem>>, vector<1x4x17xf32>,
    %c0_2 = arith.constant 0 : index
    %c0_3 = arith.constant 0 : index
    %c384 = arith.constant 384 : index
    %11 = vector.load %arg5[%c0_2, %c0_3, %c384] : memref<2x4x512xf32, #tpu.memory_space<vmem>>, vector<1x4x17xf32>
    %12 = vector.shape_cast %11 : vector<1x4x17xf32> to vector<4x17xf32>
    %13 = vector.shape_cast %7 : vector<4x17xf32> to vector<1x4x17xf32>
    tpu.vector_store %arg5[%c0_2, %c0_3, %c384], %13 {strides = array<i32>} : memref<2x4x512xf32, #tpu.memory_space<vmem>>, vector<1x4x17xf32>,
    %c0_4 = arith.constant 0 : index
    %c0_5 = arith.constant 0 : index
    %c0_6 = arith.constant 0 : index
    %14 = vector.load %arg1[%c0_4, %c0_5, %c0_6] : memref<2x4x256xf32, #tpu.memory_space<vmem>>, vector<1x4x256xf32>
    %15 = vector.shape_cast %14 : vector<1x4x256xf32> to vector<4x256xf32>
    %c0_7 = arith.constant 0 : index
    %c0_8 = arith.constant 0 : index
    %c128 = arith.constant 128 : index
    %16 = vector.load %arg5[%c0_7, %c0_8, %c128] : memref<2x4x512xf32, #tpu.memory_space<vmem>>, vector<1x4x256xf32>
    %17 = vector.shape_cast %16 : vector<1x4x256xf32> to vector<4x256xf32>
    %18 = vector.shape_cast %15 : vector<4x256xf32> to vector<1x4x256xf32>
    tpu.vector_store %arg5[%c0_7, %c0_8, %c128], %18 {strides = array<i32>} : memref<2x4x512xf32, #tpu.memory_space<vmem>>, vector<1x4x256xf32>,
    %c0_9 = arith.constant 0 : index
    %c0_10 = arith.constant 0 : index
    %c111_11 = arith.constant 111 : index
    %19 = vector.load %arg5[%c0_9, %c0_10, %c111_11] : memref<2x4x512xf32, #tpu.memory_space<vmem>>, vector<1x4x256xf32>
    %20 = vector.shape_cast %19 : vector<1x4x256xf32> to vector<4x256xf32>
    %cst_12 = arith.constant 0.000000e+00 : f32
    %21 = vector.broadcast %cst_12 : f32 to vector<4x256xf32>
    %22 = arith.select %4, %20, %21 : vector<4x256xi1>, vector<4x256xf32>
    %c0_13 = arith.constant 0 : index
    %c0_14 = arith.constant 0 : index
    %23 = vector.load %arg6[%c0_13, %c0_14] : memref<36x512xf32, #tpu.memory_space<vmem>>, vector<4x256xf32>
    tpu.vector_store %arg6[%c0_13, %c0_14], %22 {strides = array<i32>} : memref<36x512xf32, #tpu.memory_space<vmem>>, vector<4x256xf32>,
    %c0_15 = arith.constant 0 : index
    %c0_16 = arith.constant 0 : index
    %c112 = arith.constant 112 : index
    %24 = vector.load %arg5[%c0_15, %c0_16, %c112] : memref<2x4x512xf32, #tpu.memory_space<vmem>>, vector<1x4x256xf32>
    %25 = vector.shape_cast %24 : vector<1x4x256xf32> to vector<4x256xf32>
    %c4 = arith.constant 4 : index
    %c0_17 = arith.constant 0 : index
    %26 = vector.load %arg6[%c4, %c0_17] : memref<36x512xf32, #tpu.memory_space<vmem>>, vector<4x256xf32>
    tpu.vector_store %arg6[%c4, %c0_17], %25 {strides = array<i32>} : memref<36x512xf32, #tpu.memory_space<vmem>>, vector<4x256xf32>,
    %c0_18 = arith.constant 0 : index
    %c0_19 = arith.constant 0 : index
    %c113 = arith.constant 113 : index
    %27 = vector.load %arg5[%c0_18, %c0_19, %c113] : memref<2x4x512xf32, #tpu.memory_space<vmem>>, vector<1x4x256xf32>
    %28 = vector.shape_cast %27 : vector<1x4x256xf32> to vector<4x256xf32>
    %cst_20 = arith.constant 0.000000e+00 : f32
    %29 = vector.broadcast %cst_20 : f32 to vector<4x256xf32>
    %30 = arith.select %6, %28, %29 : vector<4x256xi1>, vector<4x256xf32>
    %c8 = arith.constant 8 : index
    %c0_21 = arith.constant 0 : index
    %31 = vector.load %arg6[%c8, %c0_21] : memref<36x512xf32, #tpu.memory_space<vmem>>, vector<4x256xf32>
    tpu.vector_store %arg6[%c8, %c0_21], %30 {strides = array<i32>} : memref<36x512xf32, #tpu.memory_space<vmem>>, vector<4x256xf32>,
    %c0_22 = arith.constant 0 : index
    %c0_23 = arith.constant 0 : index
    %c127 = arith.constant 127 : index
    %32 = vector.load %arg5[%c0_22, %c0_23, %c127] : memref<2x4x512xf32, #tpu.memory_space<vmem>>, vector<1x4x256xf32>
    %33 = vector.shape_cast %32 : vector<1x4x256xf32> to vector<4x256xf32>
    %cst_24 = arith.constant 0.000000e+00 : f32
    %34 = vector.broadcast %cst_24 : f32 to vector<4x256xf32>
    %35 = arith.select %4, %33, %34 : vector<4x256xi1>, vector<4x256xf32>
    %c12 = arith.constant 12 : index
    %c0_25 = arith.constant 0 : index
    %36 = vector.load %arg6[%c12, %c0_25] : memref<36x512xf32, #tpu.memory_space<vmem>>, vector<4x256xf32>
    tpu.vector_store %arg6[%c12, %c0_25], %35 {strides = array<i32>} : memref<36x512xf32, #tpu.memory_space<vmem>>, vector<4x256xf32>,
    %c0_26 = arith.constant 0 : index
    %c0_27 = arith.constant 0 : index
    %c128_28 = arith.constant 128 : index
    %37 = vector.load %arg5[%c0_26, %c0_27, %c128_28] : memref<2x4x512xf32, #tpu.memory_space<vmem>>, vector<1x4x256xf32>
    %38 = vector.shape_cast %37 : vector<1x4x256xf32> to vector<4x256xf32>
    %c16 = arith.constant 16 : index
    %c0_29 = arith.constant 0 : index
    %39 = vector.load %arg6[%c16, %c0_29] : memref<36x512xf32, #tpu.memory_space<vmem>>, vector<4x256xf32>
    tpu.vector_store %arg6[%c16, %c0_29], %38 {strides = array<i32>} : memref<36x512xf32, #tpu.memory_space<vmem>>, vector<4x256xf32>,
    %c0_30 = arith.constant 0 : index
    %c0_31 = arith.constant 0 : index
    %c129 = arith.constant 129 : index
    %40 = vector.load %arg5[%c0_30, %c0_31, %c129] : memref<2x4x512xf32, #tpu.memory_space<vmem>>, vector<1x4x256xf32>
    %41 = vector.shape_cast %40 : vector<1x4x256xf32> to vector<4x256xf32>
    %cst_32 = arith.constant 0.000000e+00 : f32
    %42 = vector.broadcast %cst_32 : f32 to vector<4x256xf32>
    %43 = arith.select %6, %41, %42 : vector<4x256xi1>, vector<4x256xf32>
    %c20 = arith.constant 20 : index
    %c0_33 = arith.constant 0 : index
    %44 = vector.load %arg6[%c20, %c0_33] : memref<36x512xf32, #tpu.memory_space<vmem>>, vector<4x256xf32>
    tpu.vector_store %arg6[%c20, %c0_33], %43 {strides = array<i32>} : memref<36x512xf32, #tpu.memory_space<vmem>>, vector<4x256xf32>,
    %c0_34 = arith.constant 0 : index
    %c0_35 = arith.constant 0 : index
    %c143 = arith.constant 143 : index
    %45 = vector.load %arg5[%c0_34, %c0_35, %c143] : memref<2x4x512xf32, #tpu.memory_space<vmem>>, vector<1x4x256xf32>
    %46 = vector.shape_cast %45 : vector<1x4x256xf32> to vector<4x256xf32>
    %cst_36 = arith.constant 0.000000e+00 : f32
    %47 = vector.broadcast %cst_36 : f32 to vector<4x256xf32>
    %48 = arith.select %4, %46, %47 : vector<4x256xi1>, vector<4x256xf32>
    %c24 = arith.constant 24 : index
    %c0_37 = arith.constant 0 : index
    %49 = vector.load %arg6[%c24, %c0_37] : memref<36x512xf32, #tpu.memory_space<vmem>>, vector<4x256xf32>
    tpu.vector_store %arg6[%c24, %c0_37], %48 {strides = array<i32>} : memref<36x512xf32, #tpu.memory_space<vmem>>, vector<4x256xf32>,
    %c0_38 = arith.constant 0 : index
    %c0_39 = arith.constant 0 : index
    %c144 = arith.constant 144 : index
    %50 = vector.load %arg5[%c0_38, %c0_39, %c144] : memref<2x4x512xf32, #tpu.memory_space<vmem>>, vector<1x4x256xf32>
    %51 = vector.shape_cast %50 : vector<1x4x256xf32> to vector<4x256xf32>
    %c28 = arith.constant 28 : index
    %c0_40 = arith.constant 0 : index
    %52 = vector.load %arg6[%c28, %c0_40] : memref<36x512xf32, #tpu.memory_space<vmem>>, vector<4x256xf32>
    tpu.vector_store %arg6[%c28, %c0_40], %51 {strides = array<i32>} : memref<36x512xf32, #tpu.memory_space<vmem>>, vector<4x256xf32>,
    %c0_41 = arith.constant 0 : index
    %c0_42 = arith.constant 0 : index
    %c145 = arith.constant 145 : index
    %53 = vector.load %arg5[%c0_41, %c0_42, %c145] : memref<2x4x512xf32, #tpu.memory_space<vmem>>, vector<1x4x256xf32>
    %54 = vector.shape_cast %53 : vector<1x4x256xf32> to vector<4x256xf32>
    %cst_43 = arith.constant 0.000000e+00 : f32
    %55 = vector.broadcast %cst_43 : f32 to vector<4x256xf32>
    %56 = arith.select %6, %54, %55 : vector<4x256xi1>, vector<4x256xf32>
    %c32 = arith.constant 32 : index
    %c0_44 = arith.constant 0 : index
    %57 = vector.load %arg6[%c32, %c0_44] : memref<36x512xf32, #tpu.memory_space<vmem>>, vector<4x256xf32>
    tpu.vector_store %arg6[%c32, %c0_44], %56 {strides = array<i32>} : memref<36x512xf32, #tpu.memory_space<vmem>>, vector<4x256xf32>,
    %c1 = arith.constant 1 : index
    %c0_45 = arith.constant 0 : index
    %c111_46 = arith.constant 111 : index
    %58 = vector.load %arg5[%c1, %c0_45, %c111_46] : memref<2x4x512xf32, #tpu.memory_space<vmem>>, vector<1x4x17xf32>
    %59 = vector.shape_cast %58 : vector<1x4x17xf32> to vector<4x17xf32>
    %60 = vector.shape_cast %7 : vector<4x17xf32> to vector<1x4x17xf32>
    tpu.vector_store %arg5[%c1, %c0_45, %c111_46], %60 {strides = array<i32>} : memref<2x4x512xf32, #tpu.memory_space<vmem>>, vector<1x4x17xf32>,
    %c1_47 = arith.constant 1 : index
    %c0_48 = arith.constant 0 : index
    %c384_49 = arith.constant 384 : index
    %61 = vector.load %arg5[%c1_47, %c0_48, %c384_49] : memref<2x4x512xf32, #tpu.memory_space<vmem>>, vector<1x4x17xf32>
    %62 = vector.shape_cast %61 : vector<1x4x17xf32> to vector<4x17xf32>
    %63 = vector.shape_cast %7 : vector<4x17xf32> to vector<1x4x17xf32>
    tpu.vector_store %arg5[%c1_47, %c0_48, %c384_49], %63 {strides = array<i32>} : memref<2x4x512xf32, #tpu.memory_space<vmem>>, vector<1x4x17xf32>,
    %c1_50 = arith.constant 1 : index
    %c0_51 = arith.constant 0 : index
    %c0_52 = arith.constant 0 : index
    %64 = vector.load %arg1[%c1_50, %c0_51, %c0_52] : memref<2x4x256xf32, #tpu.memory_space<vmem>>, vector<1x4x256xf32>
    %65 = vector.shape_cast %64 : vector<1x4x256xf32> to vector<4x256xf32>
    %c1_53 = arith.constant 1 : index
    %c0_54 = arith.constant 0 : index
    %c128_55 = arith.constant 128 : index
    %66 = vector.load %arg5[%c1_53, %c0_54, %c128_55] : memref<2x4x512xf32, #tpu.memory_space<vmem>>, vector<1x4x256xf32>
    %67 = vector.shape_cast %66 : vector<1x4x256xf32> to vector<4x256xf32>
    %68 = vector.shape_cast %65 : vector<4x256xf32> to vector<1x4x256xf32>
    tpu.vector_store %arg5[%c1_53, %c0_54, %c128_55], %68 {strides = array<i32>} : memref<2x4x512xf32, #tpu.memory_space<vmem>>, vector<1x4x256xf32>,
    %c1_56 = arith.constant 1 : index
    %c0_57 = arith.constant 0 : index
    %c111_58 = arith.constant 111 : index
    %69 = vector.load %arg5[%c1_56, %c0_57, %c111_58] : memref<2x4x512xf32, #tpu.memory_space<vmem>>, vector<1x4x256xf32>
    %70 = vector.shape_cast %69 : vector<1x4x256xf32> to vector<4x256xf32>
    %cst_59 = arith.constant 0.000000e+00 : f32
    %71 = vector.broadcast %cst_59 : f32 to vector<4x256xf32>
    %72 = arith.select %4, %70, %71 : vector<4x256xi1>, vector<4x256xf32>
    %c0_60 = arith.constant 0 : index
    %c256 = arith.constant 256 : index
    %73 = vector.load %arg6[%c0_60, %c256] : memref<36x512xf32, #tpu.memory_space<vmem>>, vector<4x256xf32>
    tpu.vector_store %arg6[%c0_60, %c256], %72 {strides = array<i32>} : memref<36x512xf32, #tpu.memory_space<vmem>>, vector<4x256xf32>,
    %c1_61 = arith.constant 1 : index
    %c0_62 = arith.constant 0 : index
    %c112_63 = arith.constant 112 : index
    %74 = vector.load %arg5[%c1_61, %c0_62, %c112_63] : memref<2x4x512xf32, #tpu.memory_space<vmem>>, vector<1x4x256xf32>
    %75 = vector.shape_cast %74 : vector<1x4x256xf32> to vector<4x256xf32>
    %c4_64 = arith.constant 4 : index
    %c256_65 = arith.constant 256 : index
    %76 = vector.load %arg6[%c4_64, %c256_65] : memref<36x512xf32, #tpu.memory_space<vmem>>, vector<4x256xf32>
    tpu.vector_store %arg6[%c4_64, %c256_65], %75 {strides = array<i32>} : memref<36x512xf32, #tpu.memory_space<vmem>>, vector<4x256xf32>,
    %c1_66 = arith.constant 1 : index
    %c0_67 = arith.constant 0 : index
    %c113_68 = arith.constant 113 : index
    %77 = vector.load %arg5[%c1_66, %c0_67, %c113_68] : memref<2x4x512xf32, #tpu.memory_space<vmem>>, vector<1x4x256xf32>
    %78 = vector.shape_cast %77 : vector<1x4x256xf32> to vector<4x256xf32>
    %cst_69 = arith.constant 0.000000e+00 : f32
    %79 = vector.broadcast %cst_69 : f32 to vector<4x256xf32>
    %80 = arith.select %6, %78, %79 : vector<4x256xi1>, vector<4x256xf32>
    %c8_70 = arith.constant 8 : index
    %c256_71 = arith.constant 256 : index
    %81 = vector.load %arg6[%c8_70, %c256_71] : memref<36x512xf32, #tpu.memory_space<vmem>>, vector<4x256xf32>
    tpu.vector_store %arg6[%c8_70, %c256_71], %80 {strides = array<i32>} : memref<36x512xf32, #tpu.memory_space<vmem>>, vector<4x256xf32>,
    %c1_72 = arith.constant 1 : index
    %c0_73 = arith.constant 0 : index
    %c127_74 = arith.constant 127 : index
    %82 = vector.load %arg5[%c1_72, %c0_73, %c127_74] : memref<2x4x512xf32, #tpu.memory_space<vmem>>, vector<1x4x256xf32>
    %83 = vector.shape_cast %82 : vector<1x4x256xf32> to vector<4x256xf32>
    %cst_75 = arith.constant 0.000000e+00 : f32
    %84 = vector.broadcast %cst_75 : f32 to vector<4x256xf32>
    %85 = arith.select %4, %83, %84 : vector<4x256xi1>, vector<4x256xf32>
    %c12_76 = arith.constant 12 : index
    %c256_77 = arith.constant 256 : index
    %86 = vector.load %arg6[%c12_76, %c256_77] : memref<36x512xf32, #tpu.memory_space<vmem>>, vector<4x256xf32>
    tpu.vector_store %arg6[%c12_76, %c256_77], %85 {strides = array<i32>} : memref<36x512xf32, #tpu.memory_space<vmem>>, vector<4x256xf32>,
    %c1_78 = arith.constant 1 : index
    %c0_79 = arith.constant 0 : index
    %c128_80 = arith.constant 128 : index
    %87 = vector.load %arg5[%c1_78, %c0_79, %c128_80] : memref<2x4x512xf32, #tpu.memory_space<vmem>>, vector<1x4x256xf32>
    %88 = vector.shape_cast %87 : vector<1x4x256xf32> to vector<4x256xf32>
    %c16_81 = arith.constant 16 : index
    %c256_82 = arith.constant 256 : index
    %89 = vector.load %arg6[%c16_81, %c256_82] : memref<36x512xf32, #tpu.memory_space<vmem>>, vector<4x256xf32>
    tpu.vector_store %arg6[%c16_81, %c256_82], %88 {strides = array<i32>} : memref<36x512xf32, #tpu.memory_space<vmem>>, vector<4x256xf32>,
    %c1_83 = arith.constant 1 : index
    %c0_84 = arith.constant 0 : index
    %c129_85 = arith.constant 129 : index
    %90 = vector.load %arg5[%c1_83, %c0_84, %c129_85] : memref<2x4x512xf32, #tpu.memory_space<vmem>>, vector<1x4x256xf32>
    %91 = vector.shape_cast %90 : vector<1x4x256xf32> to vector<4x256xf32>
    %cst_86 = arith.constant 0.000000e+00 : f32
    %92 = vector.broadcast %cst_86 : f32 to vector<4x256xf32>
    %93 = arith.select %6, %91, %92 : vector<4x256xi1>, vector<4x256xf32>
    %c20_87 = arith.constant 20 : index
    %c256_88 = arith.constant 256 : index
    %94 = vector.load %arg6[%c20_87, %c256_88] : memref<36x512xf32, #tpu.memory_space<vmem>>, vector<4x256xf32>
    tpu.vector_store %arg6[%c20_87, %c256_88], %93 {strides = array<i32>} : memref<36x512xf32, #tpu.memory_space<vmem>>, vector<4x256xf32>,
    %c1_89 = arith.constant 1 : index
    %c0_90 = arith.constant 0 : index
    %c143_91 = arith.constant 143 : index
    %95 = vector.load %arg5[%c1_89, %c0_90, %c143_91] : memref<2x4x512xf32, #tpu.memory_space<vmem>>, vector<1x4x256xf32>
    %96 = vector.shape_cast %95 : vector<1x4x256xf32> to vector<4x256xf32>
    %cst_92 = arith.constant 0.000000e+00 : f32
    %97 = vector.broadcast %cst_92 : f32 to vector<4x256xf32>
    %98 = arith.select %4, %96, %97 : vector<4x256xi1>, vector<4x256xf32>
    %c24_93 = arith.constant 24 : index
    %c256_94 = arith.constant 256 : index
    %99 = vector.load %arg6[%c24_93, %c256_94] : memref<36x512xf32, #tpu.memory_space<vmem>>, vector<4x256xf32>
    tpu.vector_store %arg6[%c24_93, %c256_94], %98 {strides = array<i32>} : memref<36x512xf32, #tpu.memory_space<vmem>>, vector<4x256xf32>,
    %c1_95 = arith.constant 1 : index
    %c0_96 = arith.constant 0 : index
    %c144_97 = arith.constant 144 : index
    %100 = vector.load %arg5[%c1_95, %c0_96, %c144_97] : memref<2x4x512xf32, #tpu.memory_space<vmem>>, vector<1x4x256xf32>
    %101 = vector.shape_cast %100 : vector<1x4x256xf32> to vector<4x256xf32>
    %c28_98 = arith.constant 28 : index
    %c256_99 = arith.constant 256 : index
    %102 = vector.load %arg6[%c28_98, %c256_99] : memref<36x512xf32, #tpu.memory_space<vmem>>, vector<4x256xf32>
    tpu.vector_store %arg6[%c28_98, %c256_99], %101 {strides = array<i32>} : memref<36x512xf32, #tpu.memory_space<vmem>>, vector<4x256xf32>,
    %c1_100 = arith.constant 1 : index
    %c0_101 = arith.constant 0 : index
    %c145_102 = arith.constant 145 : index
    %103 = vector.load %arg5[%c1_100, %c0_101, %c145_102] : memref<2x4x512xf32, #tpu.memory_space<vmem>>, vector<1x4x256xf32>
    %104 = vector.shape_cast %103 : vector<1x4x256xf32> to vector<4x256xf32>
    %cst_103 = arith.constant 0.000000e+00 : f32
    %105 = vector.broadcast %cst_103 : f32 to vector<4x256xf32>
    %106 = arith.select %6, %104, %105 : vector<4x256xi1>, vector<4x256xf32>
    %c32_104 = arith.constant 32 : index
    %c256_105 = arith.constant 256 : index
    %107 = vector.load %arg6[%c32_104, %c256_105] : memref<36x512xf32, #tpu.memory_space<vmem>>, vector<4x256xf32>
    tpu.vector_store %arg6[%c32_104, %c256_105], %106 {strides = array<i32>} : memref<36x512xf32, #tpu.memory_space<vmem>>, vector<4x256xf32>,
    %c0_106 = arith.constant 0 : index
    %c0_107 = arith.constant 0 : index
    %108 = vector.load %arg2[%c0_106, %c0_107] : memref<8x36xf32, #tpu.memory_space<vmem>>, vector<8x36xf32>
    %c0_108 = arith.constant 0 : index
    %c0_109 = arith.constant 0 : index
    %109 = vector.load %arg6[%c0_108, %c0_109] : memref<36x512xf32, #tpu.memory_space<vmem>>, vector<36x512xf32>
    %cst_110 = arith.constant dense<0.000000e+00> : vector<8x512xf32>
    %110 = tpu.matmul %108, %109, %cst_110 {dimension_numbers = #tpu.dot_dimension_numbers<[1], [0], [0], [1], [0, 0, 1, 1], [], []>} : vector<8x36xf32>, vector<36x512xf32>, vector<8x512xf32> -> vector<8x512xf32>
    %c0_111 = arith.constant 0 : index
    %c0_112 = arith.constant 0 : index
    %111 = vector.load %arg3[%c0_111, %c0_112] : memref<8x1xf32, #tpu.memory_space<vmem>>, vector<8x1xf32>
    %112 = vector.broadcast %111 : vector<8x1xf32> to vector<8x512xf32>
    %113 = arith.addf %110, %112 : vector<8x512xf32>
    %cst_113 = arith.constant 0.000000e+00 : f32
    %114 = vector.broadcast %cst_113 : f32 to vector<8x512xf32>
    %115 = arith.maximumf %113, %114 : vector<8x512xf32>
    %116 = vector.extract_strided_slice %115 {offsets = [0, 0], sizes = [8, 256], strides = [1, 1]} : vector<8x512xf32> to vector<8x256xf32>
    %c0_114 = arith.constant 0 : index
    %c0_115 = arith.constant 0 : index
    %c0_116 = arith.constant 0 : index
    %117 = vector.load %arg4[%c0_114, %c0_115, %c0_116] : memref<2x8x256xf32, #tpu.memory_space<vmem>>, vector<1x8x256xf32>
    %118 = vector.shape_cast %117 : vector<1x8x256xf32> to vector<8x256xf32>
    %119 = vector.shape_cast %116 : vector<8x256xf32> to vector<1x8x256xf32>
    tpu.vector_store %arg4[%c0_114, %c0_115, %c0_116], %119 {strides = array<i32>} : memref<2x8x256xf32, #tpu.memory_space<vmem>>, vector<1x8x256xf32>,
    %120 = vector.extract_strided_slice %115 {offsets = [0, 256], sizes = [8, 256], strides = [1, 1]} : vector<8x512xf32> to vector<8x256xf32>
    %c1_117 = arith.constant 1 : index
    %c0_118 = arith.constant 0 : index
    %c0_119 = arith.constant 0 : index
    %121 = vector.load %arg4[%c1_117, %c0_118, %c0_119] : memref<2x8x256xf32, #tpu.memory_space<vmem>>, vector<1x8x256xf32>
    %122 = vector.shape_cast %121 : vector<1x8x256xf32> to vector<8x256xf32>
    %123 = vector.shape_cast %120 : vector<8x256xf32> to vector<1x8x256xf32>
    tpu.vector_store %arg4[%c1_117, %c0_118, %c0_119], %123 {strides = array<i32>} : memref<2x8x256xf32, #tpu.memory_space<vmem>>, vector<1x8x256xf32>,
    return
  }
  func.func @transform_0(%arg0: i32) -> (i32, i32, i32) {
    %c0_i32 = arith.constant 0 : i32
    %c0_i32_0 = arith.constant 0 : i32
    %c0_i32_1 = arith.constant 0 : i32
    %c0_i32_2 = arith.constant 0 : i32
    return %c0_i32, %c0_i32_0, %c0_i32_1 : i32, i32, i32
  }
  func.func @transform_1(%arg0: i32) -> (i32, i32) {
    %c0_i32 = arith.constant 0 : i32
    %c0_i32_0 = arith.constant 0 : i32
    %c0_i32_1 = arith.constant 0 : i32
    return %c0_i32, %c0_i32_0 : i32, i32
  }
  func.func @transform_2(%arg0: i32) -> (i32, i32) {
    %c0_i32 = arith.constant 0 : i32
    %c0_i32_0 = arith.constant 0 : i32
    %c0_i32_1 = arith.constant 0 : i32
    return %c0_i32, %c0_i32_0 : i32, i32
  }
  func.func @transform_3(%arg0: i32) -> (i32, i32, i32) {
    %c0_i32 = arith.constant 0 : i32
    %c0_i32_0 = arith.constant 0 : i32
    %c0_i32_1 = arith.constant 0 : i32
    %c0_i32_2 = arith.constant 0 : i32
    return %c0_i32, %c0_i32_0, %c0_i32_1 : i32, i32, i32
  }
}

</mosaic_0001>

<bundles_post_ra>
// kernel: tpu_custom_call.1
= control target key start
LH: loop header
LB: loop body
LE: loop exit
PB: predicated region body
PF: predicated region fallthrough
CT: control target
= control target key end

     0   :  { %8 = vsyncpa [#allocation5], 0  ;;  %s907_s0 = inlined_call_operand.hbm [shape: f32[2,4,256], index: 0, kind: input, shape index: {}]   ;;  %s908_s1 = inlined_call_operand.vmem [shape: f32[8,36], index: 1, kind: input, shape index: {}]   ;;  %s909_s2 = inlined_call_operand.vmem [shape: f32[8,1], index: 2, kind: input, shape index: {}]   ;;  %s910_s3 = inlined_call_operand.hbm [shape: f32[2,8,256], index: 3, kind: output, shape index: {}]  }
   0x1   :  { %9 = vsyncpa [#allocation6], 0  ;;  %s699_s12 = smov [#allocation4]   ;;  %s651_s16 = scalar_lea.hbm %s907_s0, 256 }
   0x2   :  { %s15_s13 = sshll.u32 %s699_s12, 4  ;;  %p652_p0 = scmp.ne.s32.totalorder %s907_s0, %s651_s16  ;;  %s16_s13 = int_to_ptr.vmem [resolvable:$true] %s15_s13 }
   0x3   :  { %p655_p1 = scmp.lt.u32.totalorder %s651_s16, %s907_s0 }
   0x5   :  { %p657_p2 = pnand %p655_p1, %p652_p0 }
   0x7   :  { %660 = shalt.err (!%p657_p2)
}
   0x8   :  { %s661_s21 = scalar_lea.vmem %s16_s13, 256  ;;  %p666_p4 = scmp.lt.s32.totalorder %s16_s13, %s16_s13 }
   0x9   :  { %p662_p3 = scmp.ne.s32.totalorder %s16_s13, %s661_s21  ;;  %p667_p5 = scmp.lt.s32.totalorder %s661_s21, %s661_s21 }
   0xb   :  { %p668_p6 = por %p667_p5, %p666_p4 }
   0xd   :  { %p669_p7 = pnand %p668_p6, %p662_p3 }
   0xf   :  { %672 = shalt.err (!%p669_p7)
}
  0x10   :  { %s700_s22 = smov 128   ;;  %s701_s23 = smov 8  }
  0x11   :  { %21 = dma.hbm_to_vmem [thread:$0]  %s907_s0, 256, %s16_s13, [#allocation5], %s700_s22, %s700_s22, %s701_s23  }
  0x12   :  { %695 = dma.done.wait [#allocation5], 256  }
  0x13   :  { %696 = vsyncadd [#allocation5], 4294967040  ;;  %vm38_vm0 = vcmask 1044344   ;;  %v702_v0 = vmov 0.0   ;;  %vm40_vm1 = vcmask 134144   ;;  %v746_v1 = vld [vmem:[#allocation4 + $0x8] sm:$0xff]  ;;  %v29_v31 = vlaneseq }
  0x14   :  { %221 = vst.msk [vmem:[#allocation2 + $0x10] sm:$0xf] %vm38_vm0, %v702_v0  ;;  %39 = vst.msk [vmem:[#allocation2] sm:$0xf] %vm38_vm0, %v702_v0  ;;  %502 = vmatprep.mubr.f32.mxu0 %v702_v0  ;;  %573 = vmatprep.mubr.f32.mxu1 %v702_v0  ;;  %v748_v2 = vld [vmem:[#allocation4] sm:$0xff]  ;;  %v758_v4 = vcombine.high %v746_v1, %v746_v1  ;;  %s703_s0 = smov 1   ;;  %v361_v26 = vcombine.low %v746_v1, %v746_v1 }
  0x15   :  { %41 = vst.msk [vmem:[#allocation2 + $0xc] sm:$0xf] %vm40_vm1, %v702_v0  ;;  %222 = vst.msk [vmem:[#allocation2 + $0x1c] sm:$0xf] %vm40_vm1, %v702_v0  ;;  %v754_v3 = vcombine.high %v748_v2, %v748_v2  ;;  %s704_s26 = smov 17   ;;  %s705_s27 = smov 15   ;;  %v185_v25 = vcombine.low %v748_v2, %v748_v2 }
  0x16   :  { %225 = vst [vmem:[#allocation2 + $0x14] sm:$0xff] %v746_v1  ;;  %43 = vst [vmem:[#allocation2 + $0x4] sm:$0xff] %v748_v2  ;;  %s706_s28 = smov 16   ;;  %s707_s29 = smov 127   ;;  %v711_v29 = vmov 0   ;;  %v415_v30 = vld [vmem:[%s909_s2] sm:$0xff] }
  0x17   :  { %133 = vst [vmem:[#allocation3 + $0x40] sm:$0xf] %v748_v2  ;;  %311 = vst [vmem:[#allocation3 + $0x50] sm:$0xf] %v746_v1  ;;  %s708_s30 = smov 113   ;;  %s709_s4 = smov 112   ;;  %643 = vset.pattern.permute.xlu0 %v711_v29 }
  0x18   :  { %134 = vst [vmem:[#allocation3 + $0x48] sm:$0xf] %v754_v3  ;;  %312 = vst [vmem:[#allocation3 + $0x58] sm:$0xf] %v758_v4  ;;  %s710_s5 = smov 111   ;;  %v30_v32 = vand.u32 127, %v29_v31 }
  0x19   :  { %vm114_vm2 = vcmask 7168   ;;  %vm55_vm5 = vcmask 138240   ;;  %vm94_vm6 = vcmask 121856   ;;  %vm76_vm8 = vcmask 130048   ;;  %s712_s9 = smov [#allocation7]  }
  0x1a   :  { %v31_v33 = vadd.s32 128, %v30_v32  ;;  %v32_v36 = vand.u32 15, %v30_v32  ;;  %vm146_vm10 = vcmask 1039360   ;;  %vm172_vm11 = vcmask 924672   ;;  %s594_s10 = sshll.u32 %s712_s9, 4  ;;  %s595_s10 = int_to_ptr.vmem [resolvable:$true] %s594_s10 }
  0x1b   :  { %vm193_vm12 = vcmask 916480   ;;  %vm211_vm13 = vcmask 908288   ;;  %vm425_vm14 = vcmask 1043456   ;;  %vm421_vm15 = vcmask 293888   ;;  %p678_p9 = scmp.lt.s32.totalorder %s595_s10, %s595_s10 }
  0x1c   :  { %v136_v19 = vld [vmem:[#allocation2 + $0xc] sm:$0xf]  ;;  %v314_v20 = vld [vmem:[#allocation2 + $0x1c] sm:$0xf]  ;;  %v33_v37 = vand.u32 15, %v31_v33  ;;  %vm791_vm3 = vcmp.ne.s32.totalorder %v32_v36, 0 }
  0x1d   :  { %v283_v5 = vld [vmem:[#allocation2 + $0x18] sm:$0xf]  ;;  %v104_v6 = vld [vmem:[#allocation2 + $0x8] sm:$0xf]  ;;  %v282_v7 = vld [vmem:[#allocation2 + $0x10] sm:$0xff]  ;;  %vm830_vm9 = vcmp.ne.s32.totalorder %v32_v36, 15 }
  0x1e   :  { %291 = vrot.lane.b32.xlu1 %v283_v5, %s703_s0  ;;  %112 = vrot.lane.b32.xlu0 %v104_v6, %s703_s0  ;;  %v103_v8 = vld [vmem:[#allocation2] sm:$0xff]  ;;  %v45_v10 = vld [vmem:[#allocation2 + $0x8] sm:$0xf]  ;;  %v286_v12 = vcombine.high %v282_v7, %v282_v7  ;;  %v227_v13 = vld [vmem:[#allocation2 + $0x18] sm:$0xf]  ;;  %v249_v18 = vcombine.low %v282_v7, %v282_v7  ;;  %vm795_vm4 = vcmp.ne.s32.totalorder %v33_v37, 0 }
  0x1f   :  { %v107_v9 = vcombine.high %v103_v8, %v103_v8  ;;  %v84_v11 = vld [vmem:[#allocation2 + $0x8] sm:$0xf]  ;;  %v264_v14 = vld [vmem:[#allocation2 + $0x18] sm:$0xf]  ;;  %v68_v17 = vcombine.low %v103_v8, %v103_v8  ;;  %v162_v21 = vld [vmem:[#allocation2 + $0xc] sm:$0xf] }
  0x20   :  { %v647_v15 = vld [vmem:[#allocation2 + $0x8] ss:$0 sps:$4 sm:$0xff]   ;;  %v648_v16 = vld [vmem:[#allocation2 + $0x18] ss:$0 sps:$4 sm:$0xff]   ;;  %v339_v22 = vld [vmem:[#allocation2 + $0x1c] sm:$0xf] }
  0x21   :  { %v649_v23 = vld [vmem:[#allocation2 + $0xc] ss:$0 sps:$4 sm:$0xff]   ;;  %v650_v24 = vld [vmem:[#allocation2 + $0x1c] ss:$0 sps:$4 sm:$0xff]   ;;  %vm808_vm7 = vcmp.ne.s32.totalorder %v33_v37, 15 }
  0x22   :  { %287 = vrot.lane.b32.xlu1 %v282_v7, %s703_s0  ;;  %108 = vrot.lane.b32.xlu0 %v103_v8, %s703_s0  ;;  %v201_v27 = vld [vmem:[#allocation2 + $0xc] sm:$0xf]  ;;  %v376_v28 = vld [vmem:[#allocation2 + $0x1c] sm:$0xf] }
  0x26   :  { %53 = vrot.lane.b32.xlu1 %v45_v10, %s704_s26  ;;  %110 = vrot.lane.b32.xlu0 %v107_v9, %s703_s0 }
  0x2a   :  { %92 = vrot.lane.b32.xlu1 %v84_v11, %s705_s27  ;;  %51 = vrot.lane.b32.xlu0 %v107_v9, %s704_s26 }
  0x2e   :  { %289 = vrot.lane.b32.xlu1 %v286_v12, %s703_s0  ;;  %90 = vrot.lane.b32.xlu0 %v107_v9, %s705_s27 }
  0x32   :  { %235 = vrot.lane.b32.xlu1 %v227_v13, %s704_s26  ;;  %233 = vrot.lane.b32.xlu0 %v286_v12, %s704_s26 }
  0x36   :  { %272 = vrot.lane.b32.xlu1 %v264_v14, %s705_s27  ;;  %270 = vrot.lane.b32.xlu0 %v286_v12, %s705_s27 }
  0x3a   :  { %72 = vrot.lane.b32.xlu1 %v103_v8, %s706_s28  ;;  %49 = vrot.lane.b32.xlu0 %v103_v8, %s704_s26 }
  0x3e   :  { %88 = vrot.lane.b32.xlu1 %v103_v8, %s705_s27  ;;  %74 = vrot.lane.b32.xlu0 %v647_v15, %s706_s28 }
  0x42   :  { %253 = vrot.lane.b32.xlu1 %v282_v7, %s706_s28  ;;  %231 = vrot.lane.b32.xlu0 %v282_v7, %s704_s26 }
  0x46   :  { %268 = vrot.lane.b32.xlu1 %v282_v7, %s705_s27  ;;  %255 = vrot.lane.b32.xlu0 %v648_v16, %s706_s28 }
  0x4a   :  { %142 = vrot.lane.b32.xlu1 %v754_v3, %s707_s29  ;;  %70 = vrot.lane.b32.xlu0 %v68_v17, %s706_s28 }
  0x4e   :  { %251 = vrot.lane.b32.xlu1 %v249_v18, %s706_s28  ;;  %144 = vrot.lane.b32.xlu0 %v136_v19, %s707_s29 }
  0x52   :  { %322 = vrot.lane.b32.xlu1 %v314_v20, %s707_s29  ;;  %320 = vrot.lane.b32.xlu0 %v758_v4, %s707_s29 }
  0x56   :  { %318 = vrot.lane.b32.xlu1 %v746_v1, %s707_s29  ;;  %140 = vrot.lane.b32.xlu0 %v748_v2, %s707_s29 }
  0x5a   :  { %170 = vrot.lane.b32.xlu1 %v162_v21, %s708_s30  ;;  %168 = vrot.lane.b32.xlu0 %v754_v3, %s708_s30 }
  0x5e   :  { %347 = vrot.lane.b32.xlu1 %v339_v22, %s708_s30  ;;  %345 = vrot.lane.b32.xlu0 %v758_v4, %s708_s30 }
  0x62   :  { %189 = vrot.lane.b32.xlu1 %v748_v2, %s709_s4  ;;  %166 = vrot.lane.b32.xlu0 %v748_v2, %s708_s30 }
  0x66   :  { %343 = vrot.lane.b32.xlu1 %v746_v1, %s708_s30  ;;  %191 = vrot.lane.b32.xlu0 %v649_v23, %s709_s4 }
  0x6a   :  { %367 = vrot.lane.b32.xlu1 %v650_v24, %s709_s4  ;;  %365 = vrot.lane.b32.xlu0 %v746_v1, %s709_s4 }
  0x6e   :  { %363 = vrot.lane.b32.xlu1 %v361_v26, %s709_s4  ;;  %187 = vrot.lane.b32.xlu0 %v185_v25, %s709_s4 }
  0x72   :  { %209 = vrot.lane.b32.xlu1 %v201_v27, %s710_s5  ;;  %207 = vrot.lane.b32.xlu0 %v754_v3, %s710_s5 }
  0x76   :  { %384 = vrot.lane.b32.xlu1 %v376_v28, %s710_s5  ;;  %382 = vrot.lane.b32.xlu0 %v758_v4, %s710_s5 }
  0x7a   :  { %380 = vrot.lane.b32.xlu1 %v746_v1, %s710_s5  ;;  %205 = vrot.lane.b32.xlu0 %v748_v2, %s710_s5 }
  0x7e   :  { %418 = vperm.xlu0 %643, %v415_v30  }
  0x90   :  { %v292_v34 = vpop.permute.xlu1 %291  ;;  %v113_v35 = vpop.permute.xlu0 %112 }
  0x94   :  { %v288_v38 = vpop.permute.xlu1 %287  ;;  %v109_v39 = vpop.permute.xlu0 %108 }
  0x98   :  { %v54_v42 = vpop.permute.xlu1 %53  ;;  %v111_v43 = vpop.permute.xlu0 %110 }
  0x99   :  { %v115_v44 = vsel %vm114_vm2, %v109_v39, %v111_v43  ;;  %v116_v45 = vsel %vm114_vm2, %v111_v43, %v113_v35 }
  0x9a   :  { %v119_v46 = vsel %vm791_vm3, %v115_v44, 0.0  ;;  %v120_v47 = vsel %vm795_vm4, %v116_v45, 0.0 }
  0x9b   :  { %v123_v48 = vrot.slane %v119_v46, 4  ;;  %v124_v49 = vrot.slane %v120_v47, 4 }
  0x9c   :  { %v93_v50 = vpop.permute.xlu1 %92  ;;  %v52_v51 = vpop.permute.xlu0 %51 }
  0x9d   :  { %127 = vst [vmem:[#allocation3 + $0x20] sm:$0xf0] %v123_v48  ;;  %128 = vst [vmem:[#allocation3 + $0x28] sm:$0xf0] %v124_v49  ;;  %v57_v52 = vsel %vm55_vm5, %v52_v51, %v54_v42 }
  0x9e   :  { %v61_v53 = vsel %vm795_vm4, %v57_v52, 0.0 }
  0x9f   :  { %63 = vst [vmem:[#allocation3 + $0x8] sm:$0xf] %v61_v53 }
  0xa0   :  { %v290_v55 = vpop.permute.xlu1 %289  ;;  %v91_v56 = vpop.permute.xlu0 %90 }
  0xa1   :  { %v293_v57 = vsel %vm114_vm2, %v288_v38, %v290_v55  ;;  %v294_v58 = vsel %vm114_vm2, %v290_v55, %v292_v34  ;;  %v96_v59 = vsel %vm94_vm6, %v91_v56, %v93_v50 }
  0xa2   :  { %v297_v60 = vsel %vm791_vm3, %v293_v57, 0.0  ;;  %v298_v61 = vsel %vm795_vm4, %v294_v58, 0.0  ;;  %v100_v62 = vsel %vm808_vm7, %v96_v59, 0.0 }
  0xa3   :  { %v301_v63 = vrot.slane %v297_v60, 4  ;;  %v302_v0 = vrot.slane %v298_v61, 4  ;;  %102 = vst [vmem:[#allocation3 + $0x28] sm:$0xf] %v100_v62 }
  0xa4   :  { %v236_v1 = vpop.permute.xlu1 %235  ;;  %v234_v2 = vpop.permute.xlu0 %233 }
  0xa5   :  { %305 = vst [vmem:[#allocation3 + $0x30] sm:$0xf0] %v301_v63  ;;  %306 = vst [vmem:[#allocation3 + $0x38] sm:$0xf0] %v302_v0  ;;  %v238_v3 = vsel %vm55_vm5, %v234_v2, %v236_v1 }
  0xa6   :  { %v242_v4 = vsel %vm795_vm4, %v238_v3, 0.0 }
  0xa7   :  { %244 = vst [vmem:[#allocation3 + $0x18] sm:$0xf] %v242_v4 }
  0xa8   :  { %v273_v5 = vpop.permute.xlu1 %272  ;;  %v271_v6 = vpop.permute.xlu0 %270 }
  0xa9   :  { %v275_v7 = vsel %vm94_vm6, %v271_v6, %v273_v5 }
  0xaa   :  { %v279_v8 = vsel %vm808_vm7, %v275_v7, 0.0  ;;  %v400_v28 = vld [vmem:[#allocation3 + $0x28] sm:$0xff] }
  0xab   :  { %281 = vst [vmem:[#allocation3 + $0x38] sm:$0xf] %v279_v8 }
  0xac   :  { %v73_v9 = vpop.permute.xlu1 %72  ;;  %v50_v10 = vpop.permute.xlu0 %49 }
  0xad   :  { %v56_v11 = vsel %vm55_vm5, %v50_v10, %v52_v51 }
  0xae   :  { %v60_v12 = vsel %vm791_vm3, %v56_v11, 0.0 }
  0xaf   :  { %62 = vst [vmem:[#allocation3] sm:$0xf] %v60_v12 }
  0xb0   :  { %v89_v14 = vpop.permute.xlu1 %88  ;;  %v75_v15 = vpop.permute.xlu0 %74 }
  0xb1   :  { %v95_v16 = vsel %vm94_vm6, %v89_v14, %v91_v56  ;;  %v78_v17 = vsel %vm76_vm8, %v73_v9, %v75_v15 }
  0xb2   :  { %v99_v18 = vsel %vm830_vm9, %v95_v16, 0.0  ;;  %82 = vst [vmem:[#allocation3 + $0x8] sm:$0xf0] %v78_v17  ;;  %v402_v39 = vld [vmem:[#allocation3 + $0x38] sm:$0xff] }
  0xb3   :  { %101 = vst [vmem:[#allocation3 + $0x20] sm:$0xf] %v99_v18 }
  0xb4   :  { %v254_v19 = vpop.permute.xlu1 %253  ;;  %v232_v20 = vpop.permute.xlu0 %231 }
  0xb5   :  { %v237_v21 = vsel %vm55_vm5, %v232_v20, %v234_v2 }
  0xb6   :  { %v241_v22 = vsel %vm791_vm3, %v237_v21, 0.0 }
  0xb7   :  { %243 = vst [vmem:[#allocation3 + $0x10] sm:$0xf] %v241_v22 }
  0xb8   :  { %v269_v23 = vpop.permute.xlu1 %268  ;;  %v256_v24 = vpop.permute.xlu0 %255 }
  0xb9   :  { %v274_v25 = vsel %vm94_vm6, %v269_v23, %v271_v6  ;;  %v258_v26 = vsel %vm76_vm8, %v254_v19, %v256_v24  ;;  %v396_v27 = vld [vmem:[#allocation3 + $0x8] sm:$0xff] }
  0xba   :  { %v278_v29 = vsel %vm830_vm9, %v274_v25, 0.0  ;;  %262 = vst [vmem:[#allocation3 + $0x18] sm:$0xf0] %v258_v26  ;;  %v612_v30 = vpack.c.bf16 %v400_v28, %v396_v27  ;;  %v399_v49 = vld [vmem:[#allocation3 + $0x20] sm:$0xff] }
  0xbb   :  { %280 = vst [vmem:[#allocation3 + $0x30] sm:$0xf] %v278_v29 }
  0xbc   :  { %v143_v31 = vpop.permute.xlu1 %142  ;;  %613 = vmatprep.subr.bf16.mxu0 %v612_v30  ;;  %v71_v32 = vpop.permute.xlu0 %70 }
  0xbd   :  { %v77_v33 = vsel %vm76_vm8, %v71_v32, %v73_v9 }
  0xbe   :  { %81 = vst [vmem:[#allocation3] sm:$0xf0] %v77_v33 }
  0xc0   :  { %v252_v34 = vpop.permute.xlu1 %251  ;;  %v145_v35 = vpop.permute.xlu0 %144 }
  0xc1   :  { %v257_v36 = vsel %vm76_vm8, %v252_v34, %v254_v19  ;;  %v148_v37 = vsel %vm146_vm10, %v143_v31, %v145_v35  ;;  %v398_v38 = vld [vmem:[#allocation3 + $0x18] sm:$0xff] }
  0xc2   :  { %261 = vst [vmem:[#allocation3 + $0x10] sm:$0xf0] %v257_v36  ;;  %v152_v42 = vsel %vm808_vm7, %v148_v37, 0.0  ;;  %v620_v43 = vpack.c.bf16 %v402_v39, %v398_v38  ;;  %v401_v59 = vld [vmem:[#allocation3 + $0x30] sm:$0xff] }
  0xc3   :  { %v156_v44 = vrot.slane %v152_v42, 4 }
  0xc4   :  { %v323_v45 = vpop.permute.xlu1 %322  ;;  %621 = vmatprep.subr.bf16.mxu1 %v620_v43  ;;  %v321_v46 = vpop.permute.xlu0 %320 }
  0xc5   :  { %160 = vst [vmem:[#allocation3 + $0x48] sm:$0xf0] %v156_v44  ;;  %v325_v47 = vsel %vm146_vm10, %v321_v46, %v323_v45  ;;  %v395_v48 = vld [vmem:[#allocation3] sm:$0xff] }
  0xc6   :  { %v329_v50 = vsel %vm808_vm7, %v325_v47, 0.0  ;;  %v614_v51 = vpack.c.bf16 %v399_v49, %v395_v48 }
  0xc7   :  { %v333_v52 = vrot.slane %v329_v50, 4 }
  0xc8   :  { %v319_v53 = vpop.permute.xlu1 %318  ;;  %615 = vmatpush1.bf16.msra.mxu0 %v614_v51  ;;  %v141_v55 = vpop.permute.xlu0 %140 }
  0xc9   :  { %337 = vst [vmem:[#allocation3 + $0x58] sm:$0xf0] %v333_v52  ;;  %v324_v56 = vsel %vm146_vm10, %v319_v53, %v321_v46  ;;  %v147_v57 = vsel %vm146_vm10, %v141_v55, %v143_v31  ;;  %v397_v58 = vld [vmem:[#allocation3 + $0x10] sm:$0xff]  ;;  %v394_v53 = vld [vmem:[%s908_s1] sm:$0xff]  ;;  %s673_s1 = scalar_lea.vmem %s595_s10, 512 }
  0xca   :  { %v328_v60 = vsel %vm830_vm9, %v324_v56, 0.0  ;;  %v151_v61 = vsel %vm830_vm9, %v147_v57, 0.0  ;;  %v622_v62 = vpack.c.bf16 %v401_v59, %v397_v58  ;;  %p674_p8 = scmp.ne.s32.totalorder %s595_s10, %s673_s1  ;;  %p679_p10 = scmp.lt.s32.totalorder %s673_s1, %s673_s1 }
  0xcb   :  { %v332_v63 = vrot.slane %v328_v60, 4  ;;  %v155_v0 = vrot.slane %v151_v61, 4 }
  0xcc   :  { %v171_v1 = vpop.permute.xlu1 %170  ;;  %623 = vmatpush1.bf16.msra.mxu1 %v622_v62  ;;  %v169_v2 = vpop.permute.xlu0 %168  ;;  %v404_v25 = vld [vmem:[#allocation3 + $0x48] sm:$0xff]  ;;  %p680_p11 = por %p679_p10, %p678_p9 }
  0xcd   :  { %336 = vst [vmem:[#allocation3 + $0x50] sm:$0xf0] %v332_v63  ;;  %159 = vst [vmem:[#allocation3 + $0x40] sm:$0xf0] %v155_v0  ;;  %v174_v3 = vsel %vm172_vm11, %v169_v2, %v171_v1 }
  0xce   :  { %v178_v4 = vsel %vm795_vm4, %v174_v3, 0.0  ;;  %p681_p12 = pnand %p680_p11, %p674_p8 }
  0xcf   :  { %180 = vst [vmem:[#allocation3 + $0x68] sm:$0xf] %v178_v4 }
  0xd0   :  { %v348_v5 = vpop.permute.xlu1 %347  ;;  %v346_v6 = vpop.permute.xlu0 %345  ;;  %v406_v30 = vld [vmem:[#allocation3 + $0x58] sm:$0xff] }
  0xd1   :  { %v350_v7 = vsel %vm172_vm11, %v346_v6, %v348_v5 }
  0xd2   :  { %v354_v8 = vsel %vm795_vm4, %v350_v7, 0.0 }
  0xd3   :  { %356 = vst [vmem:[#allocation3 + $0x78] sm:$0xf] %v354_v8 }
  0xd4   :  { %v190_v9 = vpop.permute.xlu1 %189  ;;  %v167_v10 = vpop.permute.xlu0 %166  ;;  %v403_v36 = vld [vmem:[#allocation3 + $0x40] sm:$0xff]  ;;  %v405_v39 = vld [vmem:[#allocation3 + $0x50] sm:$0xff] }
  0xd5   :  { %v173_v11 = vsel %vm172_vm11, %v167_v10, %v169_v2 }
  0xd6   :  { %v177_v12 = vsel %vm791_vm3, %v173_v11, 0.0 }
  0xd7   :  { %179 = vst [vmem:[#allocation3 + $0x60] sm:$0xf] %v177_v12 }
  0xd8   :  { %v344_v14 = vpop.permute.xlu1 %343  ;;  %v192_v15 = vpop.permute.xlu0 %191 }
  0xd9   :  { %v349_v16 = vsel %vm172_vm11, %v344_v14, %v346_v6  ;;  %v195_v17 = vsel %vm193_vm12, %v190_v9, %v192_v15 }
  0xda   :  { %v353_v41 = vsel %vm791_vm3, %v349_v16, 0.0  ;;  %199 = vst [vmem:[#allocation3 + $0x68] sm:$0xf0] %v195_v17 }
  0xdb   :  { %355 = vst [vmem:[#allocation3 + $0x70] sm:$0xf] %v353_v41 }
  0xdc   :  { %v368_v18 = vpop.permute.xlu1 %367  ;;  %v366_v19 = vpop.permute.xlu0 %365 }
  0xdd   :  { %v370_v20 = vsel %vm193_vm12, %v366_v19, %v368_v18 }
  0xde   :  { %374 = vst [vmem:[#allocation3 + $0x78] sm:$0xf0] %v370_v20 }
  0xe0   :  { %v364_v21 = vpop.permute.xlu1 %363  ;;  %v188_v22 = vpop.permute.xlu0 %187 }
  0xe1   :  { %v369_v23 = vsel %vm193_vm12, %v364_v21, %v366_v19  ;;  %v194_v24 = vsel %vm193_vm12, %v188_v22, %v190_v9  ;;  %v408_v26 = vld [vmem:[#allocation3 + $0x68] sm:$0xff] }
  0xe2   :  { %373 = vst [vmem:[#allocation3 + $0x70] sm:$0xf0] %v369_v23  ;;  %198 = vst [vmem:[#allocation3 + $0x60] sm:$0xf0] %v194_v24  ;;  %v616_v27 = vpack.c.bf16 %v408_v26, %v404_v25 }
  0xe4   :  { %v210_v40 = vpop.permute.xlu1 %209  ;;  %617 = vmatprep.subr.bf16.mxu0 %v616_v27  ;;  %v208_v28 = vpop.permute.xlu0 %207 }
  0xe5   :  { %v213_v29 = vsel %vm211_vm13, %v208_v28, %v210_v40  ;;  %v410_v31 = vld [vmem:[#allocation3 + $0x78] sm:$0xff] }
  0xe6   :  { %v217_v32 = vsel %vm808_vm7, %v213_v29, 0.0  ;;  %v624_v33 = vpack.c.bf16 %v410_v31, %v406_v30 }
  0xe7   :  { %219 = vst [vmem:[#allocation3 + $0x88] sm:$0xf] %v217_v32 }
  0xe8   :  { %v385_v34 = vpop.permute.xlu1 %384  ;;  %625 = vmatprep.subr.bf16.mxu1 %v624_v33  ;;  %v383_v35 = vpop.permute.xlu0 %382 }
  0xe9   :  { %v387_v37 = vsel %vm211_vm13, %v383_v35, %v385_v34  ;;  %v407_v38 = vld [vmem:[#allocation3 + $0x60] sm:$0xff]  ;;  %v409_v42 = vld [vmem:[#allocation3 + $0x70] sm:$0xff] }
  0xea   :  { %v391_v43 = vsel %vm808_vm7, %v387_v37, 0.0  ;;  %v618_v44 = vpack.c.bf16 %v407_v38, %v403_v36  ;;  %v626_v45 = vpack.c.bf16 %v409_v42, %v405_v39 }
  0xeb   :  { %393 = vst [vmem:[#allocation3 + $0x98] sm:$0xf] %v391_v43 }
  0xec   :  { %v381_v46 = vpop.permute.xlu1 %380  ;;  %619 = vmatpush1.bf16.msra.mxu0 %v618_v44  ;;  %627 = vmatpush1.bf16.msra.mxu1 %v626_v45  ;;  %v206_v47 = vpop.permute.xlu0 %205 }
  0xed   :  { %v386_v48 = vsel %vm211_vm13, %v381_v46, %v383_v35  ;;  %v212_v49 = vsel %vm211_vm13, %v206_v47, %v208_v28 }
  0xee   :  { %v390_v50 = vsel %vm830_vm9, %v386_v48, 0.0  ;;  %v216_v51 = vsel %vm830_vm9, %v212_v49, 0.0  ;;  %v412_v54 = vld [vmem:[#allocation3 + $0x88] sm:$0xf] }
  0xef   :  { %392 = vst [vmem:[#allocation3 + $0x90] sm:$0xf] %v390_v50  ;;  %218 = vst [vmem:[#allocation3 + $0x80] sm:$0xf] %v216_v51  ;;  %606 = vmatprep.subr.msk.mxu0 %vm425_vm14, %v412_v54 }
  0xf2   :  { %v414_v52 = vld [vmem:[#allocation3 + $0x98] sm:$0xf] }
  0xf3   :  { %609 = vmatprep.subr.msk.mxu1 %vm425_vm14, %v414_v52 }
  0xf6   :  { %v411_v55 = vld [vmem:[#allocation3 + $0x80] sm:$0xf]  ;;  %v413_v56 = vld [vmem:[#allocation3 + $0x90] sm:$0xf] }
  0xf7   :  { %607 = vmatpush1.msk.msra.mxu0 %vm425_vm14, %v411_v55  ;;  %610 = vmatpush1.msk.msra.mxu1 %vm425_vm14, %v413_v56 }
  0xf8   :  { %608 = vmatmul.mubr.msk.f32.vlgmr.msra.gmra.mrb[0].mxu0 %vm421_vm15, %v394_v53  ;;  %611 = vmatmul.mubr.msk.f32.vlgmr.msra.gmra.mrb[0].mxu1 %vm421_vm15, %v394_v53 }
  0xfd   :  { %v419_v13 = vpop.permute.xlu0 %418 }
 0x1cb   :  { %v504_v57 = vpop.f32.mrb[0].mxu0  ;;  %v575_v58 = vpop.f32.mrb[0].mxu1 }
 0x1cc   :  { %v505_v59 = vadd.f32 %v504_v57, %v419_v13  ;;  %v576_v60 = vadd.f32 %v575_v58, %v419_v13  ;;  %v506_v61 = vpop.f32.mrb[1].mxu0  ;;  %v577_v62 = vpop.f32.mrb[1].mxu1 }
 0x1cd   :  { %v507_v63 = vadd.f32 %v506_v61, %v419_v13  ;;  %v578_v0 = vadd.f32 %v577_v62, %v419_v13 }
 0x1ce   :  { %v580_v1 = vmax.f32 %v505_v59, 0.0  ;;  %v582_v2 = vmax.f32 %v576_v60, 0.0 }
 0x1cf   :  { %v581_v3 = vmax.f32 %v507_v63, 0.0  ;;  %v583_v4 = vmax.f32 %v578_v0, 0.0 }
 0x1d0   :  { %584 = vst [vmem:[#allocation7] sm:$0xff] %v580_v1  ;;  %587 = vst [vmem:[#allocation7 + $0x10] sm:$0xff] %v582_v2 }
 0x1d1   :  { %585 = vst [vmem:[#allocation7 + $0x8] sm:$0xff] %v581_v3  ;;  %588 = vst [vmem:[#allocation7 + $0x18] sm:$0xff] %v583_v4 }
 0x1d2   :  { %684 = shalt.err (!%p681_p12)
}
 0x1d3   :  { %s685_s13 = scalar_lea.hbm %s910_s3, 512 }
 0x1d4   :  { %p686_p13 = scmp.ne.s32.totalorder %s910_s3, %s685_s13  ;;  %p689_p0 = scmp.lt.u32.totalorder %s685_s13, %s910_s3 }
 0x1d6   :  { %p691_p1 = pnand %p689_p0, %p686_p13 }
 0x1d8   :  { %694 = shalt.err (!%p691_p1)
}
 0x1d9   :  { %s713_s18 = smov 256  }
 0x1da   :  { %600 = dma.vmem_to_hbm [thread:$0]  %s595_s10, 512, %s910_s3, [#allocation6], %s713_s18, %s713_s18, %s706_s28  }
 0x1db   :  { %697 = dma.done.wait [#allocation6], 512  }
 0x1dc   :  { %698 = vsyncadd [#allocation6], 4294966784 }
 0x1dd   :  { %604 = vsyncpa [#allocation5], 1 }
 0x1de   :  { %605 = vsyncpa [#allocation6], 1 }

</bundles_post_ra>
